<compile_context>
chip_gen: v7x
topology: tpu7x:2x2x1
jax: 0.10.0
libtpu: 0.0.40
codegen_flags: <defaults>
</compile_context>

<pallas_src>
import jax
import jax.numpy as jnp
from jax import lax
from jax.experimental import pallas as pl
from jax.experimental.pallas import tpu as pltpu

# ---- synthetic "ChemData" constants (small, deterministic) ----
NAATOKENS = 32            # number of residue/atom tokens
ATOM_TOKEN_START = 24     # tokens >= this count as "atom" tokens (is_atom)

# ---- model dims: feature dims follow the module defaults ----
D_MSA, D_PAIR, D_STATE = 256, 128, 32
D_INIT = 2 * NAATOKENS + 2 + 2                    # d_init = 2*NAATOKENS + 2 + 2
MINPOS, MAXPOS, MAXPOS_ATOM = -8, 8, 4
NBIN_RES = abs(MINPOS) + MAXPOS + 1
NBIN_ATOM = MAXPOS_ATOM + 1
NBIN = NBIN_RES + NBIN_ATOM

# ---- tiling caps (picked so double-buffered tiles stay well under 32 MiB scoped
#      VMEM on every generation, incl. v7x's 64 MiB physical) ----
_TN_CAP = 8         # MSA rows per grid step
_TI_CAP = 64        # pair tile rows (i)
_TJ_CAP = 128       # pair tile cols (j)
_VMEM_LIMIT = 64 * 1024 * 1024


def _largest_divisor(n, cap):
    t = min(n, cap)
    while n % t:
        t -= 1
    return t


# ------------------------------------------------------------------ kernels

def _msa_kernel(msa_ref, q_ref, w_ref, b_ref, out_ref):
    # msa_ref: (1, TN, L, D_INIT)   q_ref: (1, L, D_MSA)  (shared across the n axis)
    # w_ref:   (D_INIT, D_MSA)      b_ref: (1, D_MSA)     out_ref: (1, TN, L, D_MSA)
    _, tn, ll, din = msa_ref.shape
    x = msa_ref[0].reshape(tn * ll, din)                        # big MXU M dim
    y = jnp.dot(x, w_ref[...], preferred_element_type=jnp.float32) + b_ref[...]
    y = y.reshape(tn, ll, -1) + q_ref[...]                      # (1, L, D_MSA) broadcasts over TN
    out_ref[0] = y.astype(out_ref.dtype)


def _pair_kernel(ib_ref, left_ref, right_ref, ptab_ref, out_ref):
    # ib_ref:   (TI*TJ, 1) int32 positional-bin indices for this (i, j) tile
    # left_ref: (1, TJ, D_PAIR)   right_ref: (1, TI, D_PAIR)
    # ptab_ref: (NBIN, D_PAIR)    out_ref:   (1, TI, TJ, D_PAIR)
    ti = right_ref.shape[1]
    tj = left_ref.shape[1]
    nbin, dp = ptab_ref.shape
    ib = ib_ref[...]                                                          # (TI*TJ, 1)
    oh = (ib == lax.broadcasted_iota(jnp.int32, (ti * tj, nbin), 1)).astype(jnp.float32)
    pos = jnp.dot(oh, ptab_ref[...], preferred_element_type=jnp.float32)      # (TI*TJ, D_PAIR)
    pos = pos.reshape(ti, tj, dp)
    # pair[i, j] = emb_left(seq[j]) + emb_right(seq[i]) + pos[i, j]
    pair = left_ref[...] + right_ref[0][:, None, :] + pos
    out_ref[0] = pair.astype(out_ref.dtype)


# ------------------------------------------------------------------ wrappers

def _msa_emb_pallas(msa, q, W, bias2d):
    B, N, L, Din = msa.shape
    TN = _largest_divisor(N, _TN_CAP)
    return pl.pallas_call(
        _msa_kernel,
        out_shape=jax.ShapeDtypeStruct((B, N, L, D_MSA), jnp.float32),
        grid=(B, N // TN),
        in_specs=[
            pl.BlockSpec((1, TN, L, Din), lambda b, n: (b, n, 0, 0)),
            pl.BlockSpec((1, L, D_MSA), lambda b, n: (b, 0, 0)),   # ignores n: fetched once per b
            pl.BlockSpec((Din, D_MSA), lambda b, n: (0, 0)),
            pl.BlockSpec((1, D_MSA), lambda b, n: (0, 0)),
        ],
        out_specs=pl.BlockSpec((1, TN, L, D_MSA), lambda b, n: (b, n, 0, 0)),
        compiler_params=pltpu.CompilerParams(
            dimension_semantics=("parallel", "parallel"),
            vmem_limit_bytes=_VMEM_LIMIT),
    )(msa, q, W, bias2d)


def _pair_emb_pallas(ib, left, right, pos_tab):
    B, L, _ = ib.shape
    TI = _largest_divisor(L, _TI_CAP)
    TJ = _largest_divisor(L, _TJ_CAP)
    nTi, nTj = L // TI, L // TJ
    # Tile-major, index-per-sublane layout: each (b, i, j) tile becomes a contiguous
    # (TI*TJ, 1) column.  HBM holds exactly 4 B per bin (no padding), every DMA is
    # fully contiguous, and the in-kernel one-hot needs no lane->sublane relayout.
    ib_tiles = (ib.reshape(B, nTi, TI, nTj, TJ)
                  .transpose(0, 1, 3, 2, 4)
                  .reshape(B * nTi * nTj * TI * TJ, 1))
    return pl.pallas_call(
        _pair_kernel,
        out_shape=jax.ShapeDtypeStruct((B, L, L, D_PAIR), jnp.float32),
        grid=(B, nTi, nTj),
        in_specs=[
            pl.BlockSpec((TI * TJ, 1),
                         lambda b, i, j: (b * nTi * nTj + i * nTj + j, 0)),
            pl.BlockSpec((1, TJ, D_PAIR), lambda b, i, j: (b, j, 0)),
            pl.BlockSpec((1, TI, D_PAIR), lambda b, i, j: (b, i, 0)),
            pl.BlockSpec((NBIN, D_PAIR), lambda b, i, j: (0, 0)),
        ],
        out_specs=pl.BlockSpec((1, TI, TJ, D_PAIR), lambda b, i, j: (b, i, j, 0)),
        compiler_params=pltpu.CompilerParams(
            dimension_semantics=("parallel", "parallel", "parallel"),
            vmem_limit_bytes=_VMEM_LIMIT),
    )(ib_tiles, left, right, pos_tab)


# ------------------------------------------------------------------ glue

def compute_pos_bins(seq, idx, dist_matrix):
    """Integer bin indices for PositionalEncoding2D (residue seqsep bins for
    residue-residue pairs, bond-graph-distance bins for atom-atom pairs)."""
    sm_mask = seq >= ATOM_TOKEN_START                            # (B, L) is_atom
    seqsep = idx[:, None, :] - idx[:, :, None]                   # (B, L, L)
    ib_res = jnp.clip(seqsep, MINPOS, MAXPOS) - MINPOS           # [0, NBIN_RES)
    d = jnp.nan_to_num(dist_matrix, posinf=float(MAXPOS_ATOM))
    ib_atom = NBIN_RES + jnp.clip(d, 0.0, float(MAXPOS_ATOM)).astype(jnp.int32)
    sm_2d = sm_mask[:, None, :] & sm_mask[:, :, None]
    return jnp.where(sm_2d, ib_atom, ib_res).astype(jnp.int32)   # (B, L, L) lane-dense


def init_params(key):
    ks = jax.random.split(key, 6)

    def lecun(k, shape, fan_in):
        return jax.random.normal(k, shape, jnp.float32) / jnp.sqrt(float(fan_in))

    return dict(
        W=lecun(ks[0], (D_INIT, D_MSA), D_INIT),            # Linear weight, stored [in, out]
        bias=jnp.zeros((1, D_MSA), jnp.float32),            # nn.init.zeros_(emb.bias)
        emb_q=lecun(ks[1], (NAATOKENS, D_MSA), D_MSA),
        emb_left=lecun(ks[2], (NAATOKENS, D_PAIR), D_PAIR),
        emb_right=lecun(ks[3], (NAATOKENS, D_PAIR), D_PAIR),
        emb_state=lecun(ks[4], (NAATOKENS, D_STATE), D_STATE),
        pos_tab=lecun(ks[5], (NBIN, D_PAIR), D_PAIR),        # PositionalEncoding2D.emb
    )


def msa_emb_forward(params, msa, seq, idx, bond_feats, dist_matrix, same_chain=None):
    # enable_same_chain=False in the reference config => same_chain is ignored.
    # TODO(synk): bond_feats feeds rf2aa's bond-graph shortest-path helper; here
    # dist_matrix is taken as the precomputed atom bond-distance matrix, so
    # bond_feats is unused.  Dropout (p_drop) is identity at inference.
    del bond_feats, same_chain
    seq = seq.astype(jnp.int32)

    # Tiny per-(B, L) table gathers stay in plain JAX: they are O(B*L*D) and this
    # avoids rebuilding lane-sparse seq one-hots on every grid step in every kernel
    # (and removes the N-fold recompute of emb_q across the MSA depth).
    q = params["emb_q"][seq]             # (B, L, D_MSA)
    left = params["emb_left"][seq]       # (B, L, D_PAIR)
    right = params["emb_right"][seq]     # (B, L, D_PAIR)
    state = params["emb_state"][seq]     # (B, L, D_STATE)
    ib = compute_pos_bins(seq, idx, dist_matrix)              # (B, L, L) int32

    msa_out = _msa_emb_pallas(msa, q, params["W"], params["bias"])
    pair = _pair_emb_pallas(ib, left, right, params["pos_tab"])
    return msa_out, pair, state


# pure-JAX reference for a correctness check
def ref_forward(params, msa, seq, idx, bond_feats, dist_matrix):
    del bond_feats
    msa_out = (jnp.einsum("bnli,io->bnlo", msa, params["W"])
               + params["bias"][0]
               + params["emb_q"][seq][:, None])
    left = params["emb_left"][seq][:, None]        # (B, 1, L, d_pair)
    right = params["emb_right"][seq][:, :, None]   # (B, L, 1, d_pair)
    ib = compute_pos_bins(seq, idx, dist_matrix)
    pair = left + right + params["pos_tab"][ib]
    state = params["emb_state"][seq]
    return msa_out, pair, state


# ------------------------------------------------------------------ main

if __name__ == "__main__":
    B, N, L = 2, 4, 8
    key = jax.random.PRNGKey(0)
    k_msa, k_seq, k_dist, k_mask, k_params = jax.random.split(key, 5)

    params = init_params(k_params)

    msa = jax.random.normal(k_msa, (B, N, L, D_INIT), jnp.float32)
    seq = jax.random.randint(k_seq, (B, L), 0, NAATOKENS, jnp.int32)
    idx = jnp.broadcast_to(jnp.arange(L, dtype=jnp.int32), (B, L))
    bond_feats = jnp.zeros((B, L, L), jnp.int32)
    dist = jnp.abs(jax.random.normal(k_dist, (B, L, L), jnp.float32)) * 3.0
    # sprinkle some +inf like rf2aa's disconnected-atom entries
    dist = jnp.where(jax.random.uniform(k_mask, (B, L, L)) > 0.8, jnp.inf, dist)

    msa_out, pair, state = msa_emb_forward(params, msa, seq, idx, bond_feats, dist)
    jax.block_until_ready((msa_out, pair, state))

    r_msa, r_pair, r_state = ref_forward(params, msa, seq, idx, bond_feats, dist)
    assert msa_out.shape == (B, N, L, D_MSA)
    assert pair.shape == (B, L, L, D_PAIR)
    assert state.shape == (B, L, D_STATE)
    assert jnp.allclose(msa_out, r_msa, rtol=1e-3, atol=1e-3)
    assert jnp.allclose(pair, r_pair, rtol=1e-3, atol=1e-3)
    assert jnp.allclose(state, r_state, rtol=1e-3, atol=1e-3)

    print("KERNEL_OK")
</pallas_src>

<mosaic_0001>
module attributes {stable_mosaic.version = 11 : i64} {
  func.func @_msa_kernel(%arg0: i32, %arg1: i32, %arg2: memref<1x4x8x68xf32, #tpu.memory_space<vmem>>, %arg3: memref<1x8x256xf32, #tpu.memory_space<vmem>>, %arg4: memref<68x256xf32, #tpu.memory_space<vmem>>, %arg5: memref<1x256xf32, #tpu.memory_space<vmem>>, %arg6: memref<1x4x8x256xf32, #tpu.memory_space<vmem>>) attributes {dimension_semantics = [#tpu.dimension_semantics<parallel>, #tpu.dimension_semantics<parallel>], iteration_bounds = array<i64: 2, 1>, scalar_prefetch = 0 : i64, scratch_operands = 0 : i64, tpu.core_type = #tpu.core_type<tc>, window_params = [{transform_indices = @transform_0, window_bounds = array<i64: 1, 4, 8, 68>}, {transform_indices = @transform_1, window_bounds = array<i64: 1, 8, 256>}, {pipeline_mode = #tpu.pipeline_mode<synchronous>, transform_indices = @transform_2, window_bounds = array<i64: 68, 256>}, {pipeline_mode = #tpu.pipeline_mode<synchronous>, transform_indices = @transform_3, window_bounds = array<i64: 1, 256>}, {transform_indices = @transform_4, window_bounds = array<i64: 1, 4, 8, 256>}]} {
    %c0 = arith.constant 0 : index
    %c0_0 = arith.constant 0 : index
    %c0_1 = arith.constant 0 : index
    %c0_2 = arith.constant 0 : index
    %0 = vector.load %arg2[%c0, %c0_0, %c0_1, %c0_2] : memref<1x4x8x68xf32, #tpu.memory_space<vmem>>, vector<1x4x8x68xf32>
    %1 = vector.shape_cast %0 : vector<1x4x8x68xf32> to vector<4x8x68xf32>
    %2 = vector.shape_cast %1 : vector<4x8x68xf32> to vector<32x68xf32>
    %c0_3 = arith.constant 0 : index
    %c0_4 = arith.constant 0 : index
    %3 = vector.load %arg4[%c0_3, %c0_4] : memref<68x256xf32, #tpu.memory_space<vmem>>, vector<68x256xf32>
    %cst = arith.constant dense<0.000000e+00> : vector<32x256xf32>
    %4 = tpu.matmul %2, %3, %cst {dimension_numbers = #tpu.dot_dimension_numbers<[1], [0], [0], [1], [0, 0, 1, 1], [], []>} : vector<32x68xf32>, vector<68x256xf32>, vector<32x256xf32> -> vector<32x256xf32>
    %c0_5 = arith.constant 0 : index
    %c0_6 = arith.constant 0 : index
    %5 = vector.load %arg5[%c0_5, %c0_6] : memref<1x256xf32, #tpu.memory_space<vmem>>, vector<1x256xf32>
    %6 = vector.broadcast %5 : vector<1x256xf32> to vector<32x256xf32>
    %7 = arith.addf %4, %6 : vector<32x256xf32>
    %8 = vector.shape_cast %7 : vector<32x256xf32> to vector<4x8x256xf32>
    %c0_7 = arith.constant 0 : index
    %c0_8 = arith.constant 0 : index
    %c0_9 = arith.constant 0 : index
    %9 = vector.load %arg3[%c0_7, %c0_8, %c0_9] : memref<1x8x256xf32, #tpu.memory_space<vmem>>, vector<1x8x256xf32>
    %10 = vector.broadcast %9 : vector<1x8x256xf32> to vector<4x8x256xf32>
    %11 = arith.addf %8, %10 : vector<4x8x256xf32>
    %c0_10 = arith.constant 0 : index
    %c0_11 = arith.constant 0 : index
    %c0_12 = arith.constant 0 : index
    %c0_13 = arith.constant 0 : index
    %12 = vector.load %arg6[%c0_10, %c0_11, %c0_12, %c0_13] : memref<1x4x8x256xf32, #tpu.memory_space<vmem>>, vector<1x4x8x256xf32>
    %13 = vector.shape_cast %12 : vector<1x4x8x256xf32> to vector<4x8x256xf32>
    %14 = vector.shape_cast %11 : vector<4x8x256xf32> to vector<1x4x8x256xf32>
    tpu.vector_store %arg6[%c0_10, %c0_11, %c0_12, %c0_13], %14 {strides = array<i32>} : memref<1x4x8x256xf32, #tpu.memory_space<vmem>>, vector<1x4x8x256xf32>,
    return
  }
  func.func @transform_0(%arg0: i32, %arg1: i32) -> (i32, i32, i32, i32) {
    %c0_i32 = arith.constant 0 : i32
    %c0_i32_0 = arith.constant 0 : i32
    %c0_i32_1 = arith.constant 0 : i32
    return %arg0, %arg1, %c0_i32, %c0_i32_0 : i32, i32, i32, i32
  }
  func.func @transform_1(%arg0: i32, %arg1: i32) -> (i32, i32, i32) {
    %c0_i32 = arith.constant 0 : i32
    %c0_i32_0 = arith.constant 0 : i32
    %c0_i32_1 = arith.constant 0 : i32
    return %arg0, %c0_i32, %c0_i32_0 : i32, i32, i32
  }
  func.func @transform_2(%arg0: i32, %arg1: i32) -> (i32, i32) {
    %c0_i32 = arith.constant 0 : i32
    %c0_i32_0 = arith.constant 0 : i32
    %c0_i32_1 = arith.constant 0 : i32
    return %c0_i32, %c0_i32_0 : i32, i32
  }
  func.func @transform_3(%arg0: i32, %arg1: i32) -> (i32, i32) {
    %c0_i32 = arith.constant 0 : i32
    %c0_i32_0 = arith.constant 0 : i32
    %c0_i32_1 = arith.constant 0 : i32
    return %c0_i32, %c0_i32_0 : i32, i32
  }
  func.func @transform_4(%arg0: i32, %arg1: i32) -> (i32, i32, i32, i32) {
    %c0_i32 = arith.constant 0 : i32
    %c0_i32_0 = arith.constant 0 : i32
    %c0_i32_1 = arith.constant 0 : i32
    return %arg0, %arg1, %c0_i32, %c0_i32_0 : i32, i32, i32, i32
  }
}

</mosaic_0001>

<bundles_post_ra>
// kernel: tpu_custom_call.1
= control target key start
LH: loop header
LB: loop body
LE: loop exit
PB: predicated region body
PF: predicated region fallthrough
CT: control target
= control target key end

     0   :  { %s1312_s0 = inlined_call_operand.hbm [shape: f32[2,4,8,68], index: 0, kind: input, shape index: {}]   ;;  %s1313_s1 = inlined_call_operand.hbm [shape: f32[2,8,256], index: 1, kind: input, shape index: {}]   ;;  %s1314_s2 = inlined_call_operand.hbm [shape: f32[68,256], index: 2, kind: input, shape index: {}]   ;;  %s1315_s3 = inlined_call_operand.hbm [shape: f32[1,256], index: 3, kind: input, shape index: {}]   ;;  %s1316_s4 = inlined_call_operand.hbm [shape: f32[2,4,8,256], index: 4, kind: output, shape index: {}]  }
   0x1   :  { %1322 = sst [smem:[#allocation17_spill]] %s1312_s0 }
   0x2   :  { %1323 = sst [smem:[#allocation18_spill]] %s1314_s2 }
   0x3   :  { %1324 = sst [smem:[#allocation19_spill]] %s1315_s3 }
   0x4   :  { %9 = vsyncpa [#allocation3], 0 }
   0x5   :  { %11 = vsyncpa [#allocation3 + $0x1], 0 }
   0x6   :  { %12 = vsyncpa [#allocation6], 0 }
   0x7   :  { %14 = vsyncpa [#allocation6 + $0x1], 0 }
   0x8   :  { %15 = vsyncpa [#allocation9], 0 }
   0x9   :  { %16 = vsyncpa [#allocation4], 0 }
   0xa   :  { %18 = vsyncpa [#allocation4 + $0x1], 0  ;;  %s1010_s15 = smov 0   ;;  %s1012_s16 = smov 0  }
   0xb   :  { %s1014_s17 = smov 0   ;;  %s1016_s18 = smov 0  }
   0xc   :  { %s1018_s19 = smov 0   ;;  %s1020_s20 = smov 0  }
   0xd LB: > { %s1041_s21 = sadd.s32 4294967295, %s971_s20   ;;  %s609_s22 = sadd.s32 4294967294, %s971_s20   ;;  %s971_s20 = sphi %s1020_s20, %s24_s20   ;;  %s967_s19 = sphi %s1018_s19, %s1350_s19   ;;  %s963_s18 = sphi %s1016_s18, %s1349_s18   ;;  %s959_s17 = sphi %s1014_s17, %s1348_s17   ;;  %s955_s16 = sphi %s1012_s16, %s1347_s16   ;;  %s951_s15 = sphi %s1010_s15, %s1346_s15  }
   0xe   : > { %p58_p0 = scmp.ne.s32.totalorder %s955_s16, %s951_s15  ;;  %p1317_p1 = scmp.eq.s32.totalorder %s1041_s21, 0 }
   0xf   : > { %p158_p3 = scmp.eq.s32.totalorder %s609_s22, 1  ;;  %p610_p5 = scmp.ge.s32.totalorder %s971_s20, 1 }
  0x10   : > { %p1050_p4 = por %p1317_p1, %p58_p0  ;;  %p165_p7 = scmp.lt.s32.totalorder %s971_s20, 3 }
  0x11   : > { %p1055_p6 = por %p158_p3, %p58_p0  ;;  %s973_s26 = smov [#allocation7]  }
  0x12   : > { %s1325_s23 = scalar_select %p1050_p4, 1, 0 }
  0x13   : > { %s1326_s24 = scalar_select %p1055_p6, 1, 0 }
  0x14   : > { %p1060_p8 = pnand %p610_p5, %p165_p7  ;;  %s177_s27 = sshll.u32 %s973_s26, 4  ;;  %s1064_s27 = int_to_ptr.vmem [resolvable:$true] %s177_s27 }
  0x15   : > { %s974_s29 = smov [#allocation8]   ;;  %s1329_s2 = sld [smem:[#allocation18_spill]] }
  0x16   : > { %s1327_s25 = scalar_select %p1060_p8, 1, 0 }
  0x17   : > { %p680_p9 = pneg %p1060_p8  ;;  %s191_s30 = sshll.u32 %s974_s29, 4  ;;  %s1075_s30 = int_to_ptr.vmem [resolvable:$true] %s191_s30 }
  0x19   : > { %p1071_p11 = pnand %p680_p9, %p1317_p1 }
  0x1b   : > { %s761_s7 = scalar_lea.hbm %s1329_s2, 2304  ;;  %p763_p13 = pneg %p1071_p11 }
  0x1c   : > { %p762_p12 = scmp.ne.s32.totalorder %s1329_s2, %s761_s7  ;;  %p768_p5 = scmp.lt.u32.totalorder %s761_s7, %s1329_s2 }
  0x1e   : > { %p764_p0 = pnand %p763_p13, %p762_p12 }
  0x20   : > { %p765_p3 = pneg %p764_p0 }
  0x22   : > { %p770_p7 = pnand %p768_p5, %p765_p3 }
  0x24   : > { %773 = shalt.err (!%p770_p7)
}
  0x25   : > { %s774_s12 = scalar_lea.vmem %s1064_s27, 2304  ;;  %p782_p2 = scmp.lt.s32.totalorder %s1064_s27, %s1064_s27 }
  0x26   : > { %p775_p9 = scmp.ne.s32.totalorder %s1064_s27, %s774_s12  ;;  %p783_p12 = scmp.lt.s32.totalorder %s774_s12, %s774_s12 }
  0x28   : > { %p777_p10 = pnand %p775_p9, %p763_p13  ;;  %p784_p0 = por %p783_p12, %p782_p2 }
  0x2a   : > { %p778_p1 = pneg %p777_p10 }
  0x2c   : > { %p785_p6 = pnand %p784_p0, %p778_p1 }
  0x2e   : > { %788 = shalt.err (!%p785_p6)
}
  0x2f   : > { %s975_s13 = smov 256   ;;  %s976_s14 = smov 16  }
  0x30   : > { %683 = dma.hbm_to_vmem [thread:$0]  (!%p1071_p11), %s1329_s2, 2304, %s1064_s27, [#allocation6], %s975_s13, %s975_s13, %s976_s14  }
  0x31   : > { %s1330_s3 = sld [smem:[#allocation19_spill]] }
  0x37   : > { %s789_s6 = scalar_lea.hbm %s1330_s3, 32 }
  0x38   : > { %p790_p2 = scmp.ne.s32.totalorder %s1330_s3, %s789_s6  ;;  %p796_p10 = scmp.lt.u32.totalorder %s789_s6, %s1330_s3 }
  0x3a   : > { %p792_p1 = pnand %p790_p2, %p763_p13 }
  0x3c   : > { %p793_p6 = pneg %p792_p1 }
  0x3e   : > { %p798_p3 = pnand %p796_p10, %p793_p6 }
  0x40   : > { %801 = shalt.err (!%p798_p3)
}
  0x41   : > { %s802_s27 = scalar_lea.vmem %s1075_s30, 32  ;;  %p810_p12 = scmp.lt.s32.totalorder %s1075_s30, %s1075_s30 }
  0x42   : > { %p803_p5 = scmp.ne.s32.totalorder %s1075_s30, %s802_s27  ;;  %p811_p0 = scmp.lt.s32.totalorder %s802_s27, %s802_s27 }
  0x44   : > { %p805_p7 = pnand %p803_p5, %p763_p13  ;;  %p812_p2 = por %p811_p0, %p810_p12 }
  0x46   : > { %p806_p9 = pneg %p805_p7 }
  0x48   : > { %p813_p1 = pnand %p812_p2, %p806_p9 }
  0x4a   : > { %816 = shalt.err (!%p813_p1)
}
  0x4b   : > { %686 = dma.hbm_to_vmem [thread:$0]  (!%p1071_p11), %s1330_s3, 32, %s1075_s30, [#allocation9]  }
  0x4c   : > { %s36_s13 = sadd.s32 1, %s967_s19  ;;  %s45_s14 = sadd.s32 1, %s959_s17 }
  0x4d   : > { %p38_p13 = scmp.ge.s32.totalorder %s36_s13, 2  ;;  %p52_p6 = scmp.ne.s32.totalorder %s959_s17, %s955_s16 }
  0x4e   : > { %p53_p10 = scmp.eq.s32.totalorder %s971_s20, 0  ;;  %p700_p3 = scmp.lt.s32.totalorder %s971_s20, 2 }
  0x4f   : > { %s1352_s13 = smov (%p38_p13, %s36_s13), 0  ;;  %p1332_p7 = scmp.eq.s32.totalorder %s1041_s21, 1 }
  0x50   : > { %1331 = sst [smem:[#allocation16_spill]] %s1352_s13  ;;  %p54_p5 = por %p53_p10, %p52_p6 }
  0x51   : > { %p1139_p9 = por %p1332_p7, %p52_p6  ;;  %s40_s22 = ssub.s32 %s967_s19, %s1352_s13 }
  0x52   : > { %s1146_s26 = sand.u32 1, %s959_s17   ;;  %p43_p11 = scmp.eq.s32.totalorder %s40_s22, 0 }
  0x53   : > { %s1333_s28 = scalar_select %p1139_p9, 1, 0 }
  0x54   : > { %s614_s30 = sshll.u32 %s1146_s26, 5  ;;  %s637_s29 = sshll.u32 %s967_s19, 9 }
  0x55   : > { %s1151_s5 = scalar_select %p43_p11, %s959_s17, %s45_s14  }
  0x56   : > { %s1334_s0 = sld [smem:[#allocation17_spill]]  ;;  %s206_s9 = scalar_lea.vmem [#allocation2], %s614_s30 }
  0x57   : > { %s215_s10 = sshll.u32 %s206_s9, 4  ;;  %p1160_p12 = pnand %p700_p3, %p54_p5  ;;  %s1164_s10 = int_to_ptr.vmem [resolvable:$true] %s215_s10 }
  0x58   : > { %s203_s11 = scalar_lea.sflag [#allocation3], %s1146_s26 }
  0x59   : > { %p819_p2 = pneg %p1160_p12 }
  0x5c   : > { %s1156_s8 = scalar_lea.hbm %s1334_s0, %s637_s29  ;;  %s822_s30 = scalar_lea.hbm %s1334_s0, 1024 }
  0x5d   : > { %s817_s12 = scalar_lea.hbm %s1156_s8, 512  ;;  %p823_p6 = scmp.lt.u32.totalorder %s1156_s8, %s1334_s0 }
  0x5e   : > { %p818_p0 = scmp.ne.s32.totalorder %s1156_s8, %s817_s12  ;;  %p824_p10 = scmp.lt.u32.totalorder %s822_s30, %s817_s12 }
  0x5f   : > { %p826_p5 = scmp.lt.u32.totalorder %s817_s12, %s1156_s8 }
  0x60   : > { %p820_p1 = pnand %p819_p2, %p818_p0  ;;  %p825_p3 = por %p824_p10, %p823_p6 }
  0x62   : > { %p821_p13 = pneg %p820_p1  ;;  %p827_p7 = por %p826_p5, %p825_p3 }
  0x64   : > { %p828_p11 = pnand %p827_p7, %p821_p13 }
  0x66   : > { %831 = shalt.err (!%p828_p11)
}
  0x67   : > { %s832_s7 = scalar_lea.vmem %s1164_s10, 512  ;;  %s977_s9 = smov [#allocation2]  }
  0x68   : > { %p833_p0 = scmp.ne.s32.totalorder %s1164_s10, %s832_s7  ;;  %s837_s14 = sshll.u32 %s977_s9, 4  ;;  %s838_s14 = int_to_ptr.vmem [resolvable:$false] %s837_s14 }
  0x69   : > { %s839_s22 = scalar_lea.vmem %s838_s14, 1024  ;;  %p840_p4 = scmp.lt.s32.totalorder %s1164_s10, %s838_s14 }
  0x6a   : > { %p835_p1 = pnand %p833_p0, %p819_p2  ;;  %p841_p6 = scmp.lt.s32.totalorder %s839_s22, %s832_s7 }
  0x6c   : > { %p836_p9 = pneg %p835_p1  ;;  %p842_p10 = por %p841_p6, %p840_p4 }
  0x6e   : > { %p843_p3 = pnand %p842_p10, %p836_p9 }
  0x70   : > { %846 = shalt.err (!%p843_p3)
}
  0x71   : > { %s978_s12 = smov 128   ;;  %s979_s30 = smov 8  }
  0x72   : > { %690 = dma.hbm_to_vmem [thread:$0]  (!%p1160_p12), %s1156_s8, 512, %s1164_s10, %s203_s11, %s978_s12, %s978_s12, %s979_s30  }
  0x73   : > { %s225_s29 = sand.u32 1, %s971_s20   ;;  %s617_s6 = sshll.u32 %s1146_s26, 4 }
  0x74   : > { %s638_s9 = sshll.u32 %s967_s19, 8  ;;  %s229_s7 = scalar_lea.vmem [#allocation5], %s617_s6 }
  0x75   : > { %s237_s14 = sshll.u32 %s229_s7, 4  ;;  %s1200_s2 = scalar_lea.hbm %s1313_s1, %s638_s9  ;;  %s238_s14 = int_to_ptr.vmem [resolvable:$true] %s237_s14 }
  0x76   : > { %s226_s3 = scalar_lea.sflag [#allocation6], %s225_s29  ;;  %s847_s13 = scalar_lea.hbm %s1200_s2, 256 }
  0x77   : > { %p848_p4 = scmp.ne.s32.totalorder %s1200_s2, %s847_s13  ;;  %s852_s10 = scalar_lea.hbm %s1313_s1, 512 }
  0x78   : > { %p853_p5 = scmp.lt.u32.totalorder %s1200_s2, %s1313_s1  ;;  %p854_p7 = scmp.lt.u32.totalorder %s852_s10, %s847_s13 }
  0x79   : > { %p850_p9 = pnand %p848_p4, %p819_p2  ;;  %p856_p0 = scmp.lt.u32.totalorder %s847_s13, %s1200_s2 }
  0x7a   : > { %p855_p11 = por %p854_p7, %p853_p5 }
  0x7b   : > { %p851_p13 = pneg %p850_p9 }
  0x7c   : > { %p857_p1 = por %p856_p0, %p855_p11 }
  0x7e   : > { %p858_p6 = pnand %p857_p1, %p851_p13 }
  0x80   : > { %861 = shalt.err (!%p858_p6)
}
  0x81   : > { %s862_s12 = scalar_lea.vmem %s238_s14, 256  ;;  %s980_s30 = smov [#allocation5]  }
  0x82   : > { %p863_p10 = scmp.ne.s32.totalorder %s238_s14, %s862_s12  ;;  %s867_s29 = sshll.u32 %s980_s30, 4  ;;  %s868_s29 = int_to_ptr.vmem [resolvable:$false] %s867_s29 }
  0x83   : > { %s869_s6 = scalar_lea.vmem %s868_s29, 512  ;;  %p870_p9 = scmp.lt.s32.totalorder %s238_s14, %s868_s29 }
  0x84   : > { %p865_p3 = pnand %p863_p10, %p819_p2  ;;  %p871_p8 = scmp.lt.s32.totalorder %s869_s6, %s862_s12 }
  0x86   : > { %p866_p4 = pneg %p865_p3  ;;  %p872_p5 = por %p871_p8, %p870_p9 }
  0x88   : > { %p873_p7 = pnand %p872_p5, %p866_p4 }
  0x8a   : > { %876 = shalt.err (!%p873_p7)
}
  0x8b   : > { %693 = dma.hbm_to_vmem [thread:$0]  (!%p1160_p12), %s1200_s2, 256, %s238_s14, %s226_s3  }
  0x8c   : > { %p1336_p13 = scmp.ne.s32.totalorder %s1327_s25, 0 }
  0x8d   : > { %s1224_s13 = sand.u32 (!%p1336_p13), 1, %s955_s16   ;;  %p1337_p8 = scmp.ne.s32.totalorder (!%p1336_p13), %s1325_s23, 0 }
  0x8e   : > { %246 = sbr.rel (%p1336_p13) target bundleno = 417 (0x1a1), region = 36  ;;  %s621_s9 = sshll.u32 (!%p1336_p13), %s1224_s13, 5 }
  0x8f   : > { %s249_s7 = scalar_lea.sflag (!%p1336_p13), [#allocation3], %s1224_s13  ;;  %s1228_s22 = scalar_lea.vmem (!%p1336_p13), [#allocation2], %s621_s9 }
  0x95   : > { %930 = dma.done.wait (%p1337_p8), %s249_s7, 512  }
  0x96   : > { %932 = vsyncadd (%p1337_p8), %s249_s7, 4294966784  ;;  %s257_s2 = sand.u32 1, %s1041_s21   ;;  %s622_s3 = sshll.u32 %s1224_s13, 4 }
  0x97   : > { %s258_s25 = scalar_lea.sflag [#allocation6], %s257_s2  ;;  %s1236_s27 = scalar_lea.vmem [#allocation5], %s622_s3 }
  0x98   : > { %934 = dma.done.wait (%p1337_p8), %s258_s25, 256  }
  0x99   : > { %936 = vsyncadd (%p1337_p8), %s258_s25, 4294967040  ;;  %p1338_p12 = scmp.eq.s32.totalorder %s1041_s21, 0 }
  0x9b   : > { %938 = dma.done.wait (%p1338_p12), [#allocation6], 2304   ;;  %p1339_p2 = pmov %p1338_p12 }
  0x9d   : > { %940 = vsyncadd (%p1339_p2), [#allocation6], 4294964992  ;;  %p1340_p11 = pmov %p1339_p2 }
  0x9e   : > { %p1341_p0 = pmov %p1339_p2 }
  0x9f   : > { %942 = dma.done.wait (%p1340_p11), [#allocation9], 32  }
  0xa0   : > { %944 = vsyncadd (%p1341_p0), [#allocation9], 4294967264  ;;  %v981_v0 = vmov 0.0   ;;  %v306_v1 = vld [vmem:[#allocation7 + $0x8] sm:$0xff]  ;;  %v308_v2 = vld [vmem:[#allocation7 + $0x18] sm:$0xff]  ;;  %vm348_vm0 = vcmask 1043456   ;;  %v325_v31 = vlaneseq }
  0xa1   : > { %419 = vmatprep.mubr.f32.mxu0 %v981_v0  ;;  %431 = vmatprep.mubr.f32.mxu1 %v981_v0  ;;  %v305_v3 = vld [vmem:[#allocation7] sm:$0xff]  ;;  %v640_v4 = vpack.c.bf16 %v308_v2, %v306_v1  ;;  %v307_v5 = vld [vmem:[#allocation7 + $0x10] sm:$0xff]  ;;  %v310_v6 = vld [vmem:[#allocation7 + $0x28] sm:$0xff]  ;;  %vm335_vm1 = vcmask 556032   ;;  %s625_s21 = sshll.u32 %s1224_s13, 6  ;;  %s639_s26 = sshll.u32 %s963_s18, 10 }
  0xa2   : > { %v312_v7 = vld [vmem:[#allocation7 + $0x38] sm:$0xff]  ;;  %v642_v8 = vpack.c.bf16 %v307_v5, %v305_v3  ;;  %v309_v10 = vld [vmem:[#allocation7 + $0x20] sm:$0xff]  ;;  %v311_v11 = vld [vmem:[#allocation7 + $0x30] sm:$0xff]  ;;  %v326_v32 = vshrl.u32 %v325_v31, 7  ;;  %s298_s23 = scalar_lea.vmem [#allocation10], %s625_s21  ;;  %s1263_s10 = scalar_lea.hbm %s1316_s4, %s639_s26 }
  0xa3   : > { %v644_v9 = vpack.c.bf16 %v312_v7, %v310_v6  ;;  %v314_v12 = vld [vmem:[#allocation7 + $0x48] sm:$0xff]  ;;  %641 = vmatprep.subr.bf16.mxu0 %v640_v4  ;;  %656 = vmatprep.subr.bf16.mxu1 %v640_v4  ;;  %v316_v13 = vld [vmem:[#allocation7 + $0x58] sm:$0xff]  ;;  %v646_v14 = vpack.c.bf16 %v311_v11, %v309_v10  ;;  %v313_v16 = vld [vmem:[#allocation7 + $0x40] sm:$0xff]  ;;  %s479_s14 = sshll.u32 %s298_s23, 4  ;;  %s463_s11 = scalar_lea.sflag [#allocation4], %s1224_s13  ;;  %s1258_s14 = int_to_ptr.vmem [resolvable:$true] %s479_s14 }
  0xa4   : > { %643 = vmatpush1.bf16.msra.mxu0 %v642_v8  ;;  %661 = vmatpush1.bf16.msra.mxu1 %v642_v8  ;;  %v648_v15 = vpack.c.bf16 %v316_v13, %v314_v12  ;;  %v315_v17 = vld [vmem:[#allocation7 + $0x50] sm:$0xff]  ;;  %v318_v18 = vld [vmem:[#allocation7 + $0x68] sm:$0xff]  ;;  %v320_v19 = vld [vmem:[#allocation7 + $0x78] sm:$0xff]  ;;  %v327_v33 = vsub.s32 0, %v326_v32  ;;  %v331_v35 = vsub.s32 1, %v326_v32  ;;  %s877_s0 = scalar_lea.vmem %s1258_s14, 1024 }
  0xa5   : > { %645 = vmatprep.subr.bf16.mxu0 %v644_v9  ;;  %657 = vmatprep.subr.bf16.mxu1 %v644_v9  ;;  %v650_v20 = vpack.c.bf16 %v315_v17, %v313_v16  ;;  %v652_v21 = vpack.c.bf16 %v320_v19, %v318_v18  ;;  %v317_v22 = vld [vmem:[#allocation7 + $0x60] sm:$0xff]  ;;  %v319_v23 = vld [vmem:[#allocation7 + $0x70] sm:$0xff]  ;;  %v322_v25 = vld [vmem:[#allocation7 + $0x88] sm:$0xf]  ;;  %p878_p1 = scmp.ne.s32.totalorder %s1258_s14, %s877_s0  ;;  %p1342_p6 = scmp.ne.s32.totalorder %s1333_s28, 0 }
  0xa6   : > { %v654_v24 = vpack.c.bf16 %v319_v23, %v317_v22  ;;  %v321_v26 = vld [vmem:[#allocation7 + $0x80] sm:$0xf]  ;;  %v303_v28 = vld [vmem:[%s1228_s22 + $0x10] sm:$0xff]  ;;  %v302_v29 = vld [vmem:[%s1228_s22 + $0x8] sm:$0xff]  ;;  %s982_s12 = smov [#allocation10]  }
  0xa7   : > { %v301_v27 = vld [vmem:[%s1228_s22] sm:$0xff]  ;;  %v304_v30 = vld [vmem:[%s1228_s22 + $0x18] sm:$0xff]  ;;  %v323_v34 = vld [vmem:[#allocation8] sm:$0x3]  ;;  %p879_p10 = pnand %p878_p1, %p1342_p6  ;;  %s881_s30 = sshll.u32 %s982_s12, 4  ;;  %s882_s30 = int_to_ptr.vmem [resolvable:$false] %s881_s30 }
  0xa8   : > { %647 = vmatpush1.bf16.msra.mxu0 %v646_v14  ;;  %662 = vmatpush1.bf16.msra.mxu1 %v646_v14  ;;  %v328_v36 = vrot.slane %v323_v34, %v327_v33  ;;  %v332_v37 = vrot.slane %v323_v34, %v331_v35  ;;  %v444_v39 = vld [vmem:[%s1236_s27] sm:$0xff]  ;;  %v445_v44 = vld [vmem:[%s1236_s27 + $0x8] sm:$0xff]  ;;  %s883_s29 = scalar_lea.vmem %s882_s30, 2048  ;;  %p884_p4 = scmp.lt.s32.totalorder %s1258_s14, %s882_s30 }
  0xa9   : > { %649 = vmatprep.subr.bf16.mxu0 %v648_v15  ;;  %658 = vmatprep.subr.bf16.mxu1 %v648_v15  ;;  %p880_p3 = pneg %p879_p10  ;;  %p885_p9 = scmp.lt.s32.totalorder %s883_s29, %s877_s0 }
  0xab   : > { %p886_p5 = por %p885_p9, %p884_p4 }
  0xac   : > { %651 = vmatpush1.bf16.msra.mxu0 %v650_v20  ;;  %663 = vmatpush1.bf16.msra.mxu1 %v650_v20 }
  0xad   : > { %653 = vmatprep.subr.bf16.mxu0 %v652_v21  ;;  %659 = vmatprep.subr.bf16.mxu1 %v652_v21  ;;  %p887_p7 = pnand %p886_p5, %p880_p3 }
  0xb0   : > { %655 = vmatpush1.bf16.msra.mxu0 %v654_v24  ;;  %664 = vmatpush1.bf16.msra.mxu1 %v654_v24 }
  0xb1   : > { %626 = vmatprep.subr.msk.mxu0 %vm348_vm0, %v322_v25  ;;  %660 = vmatprep.subr.msk.mxu1 %vm348_vm0, %v322_v25 }
  0xb4   : > { %627 = vmatpush1.msk.msra.mxu0 %vm348_vm0, %v321_v26  ;;  %665 = vmatpush1.msk.msra.mxu1 %vm348_vm0, %v321_v26 }
  0xb5   : > { %628 = vmatmul.mubr.msk.f32.vlgmr.msra.gmra.mrb[0].mxu0 %vm335_vm1, %v301_v27  ;;  %630 = vmatmul.mubr.msk.f32.vlgmr.msra.gmra.mrb[0].mxu1 %vm335_vm1, %v303_v28 }
  0xb6   : > { %425 = vmatprep.mubr.f32.mxu0 %v981_v0  ;;  %437 = vmatprep.mubr.f32.mxu1 %v981_v0 }
  0xb9   : > { %629 = vmatmul.mubr.msk.f32.gmra.mrb[2].mxu0 %vm335_vm1, %v302_v29  ;;  %631 = vmatmul.mubr.msk.f32.gmra.mrb[2].mxu1 %vm335_vm1, %v304_v30 }
 0x188   : > { %v421_v38 = vpop.f32.mrb[0].mxu0  ;;  %v433_v40 = vpop.f32.mrb[0].mxu1 }
 0x189   : > { %v422_v41 = vadd.f32 %v421_v38, %v328_v36  ;;  %v434_v42 = vadd.f32 %v433_v40, %v328_v36  ;;  %v423_v43 = vpop.f32.mrb[1].mxu0  ;;  %v435_v45 = vpop.f32.mrb[1].mxu1 }
 0x18a   : > { %v424_v46 = vadd.f32 %v423_v43, %v332_v37  ;;  %v436_v47 = vadd.f32 %v435_v45, %v332_v37 }
 0x18b   : > { %v446_v48 = vadd.f32 %v444_v39, %v422_v41  ;;  %v450_v49 = vadd.f32 %v444_v39, %v434_v42 }
 0x18c   : > { %v447_v50 = vadd.f32 %v445_v44, %v424_v46  ;;  %v451_v51 = vadd.f32 %v445_v44, %v436_v47  ;;  %v427_v52 = vpop.f32.mrb[2].mxu0  ;;  %v439_v53 = vpop.f32.mrb[2].mxu1 }
 0x18d   : > { %454 = vst [vmem:[%s298_s23] sm:$0xff] %v446_v48  ;;  %458 = vst [vmem:[%s298_s23 + $0x20] sm:$0xff] %v450_v49  ;;  %v428_v54 = vadd.f32 %v427_v52, %v328_v36  ;;  %v440_v55 = vadd.f32 %v439_v53, %v328_v36  ;;  %v429_v56 = vpop.f32.mrb[3].mxu0  ;;  %v441_v57 = vpop.f32.mrb[3].mxu1 }
 0x18e   : > { %455 = vst [vmem:[%s298_s23 + $0x8] sm:$0xff] %v447_v50  ;;  %459 = vst [vmem:[%s298_s23 + $0x28] sm:$0xff] %v451_v51  ;;  %v430_v58 = vadd.f32 %v429_v56, %v332_v37  ;;  %v442_v59 = vadd.f32 %v441_v57, %v332_v37 }
 0x18f   : > { %v448_v60 = vadd.f32 %v444_v39, %v428_v54  ;;  %v452_v61 = vadd.f32 %v444_v39, %v440_v55 }
 0x190   : > { %v449_v62 = vadd.f32 %v445_v44, %v430_v58  ;;  %v453_v63 = vadd.f32 %v445_v44, %v442_v59 }
 0x191   : > { %456 = vst [vmem:[%s298_s23 + $0x10] sm:$0xff] %v448_v60  ;;  %460 = vst [vmem:[%s298_s23 + $0x30] sm:$0xff] %v452_v61 }
 0x192   : > { %457 = vst [vmem:[%s298_s23 + $0x18] sm:$0xff] %v449_v62  ;;  %461 = vst [vmem:[%s298_s23 + $0x38] sm:$0xff] %v453_v63 }
 0x193   : > { %890 = shalt.err (!%p887_p7)
}
 0x194   : > { %s891_s6 = scalar_lea.hbm %s1263_s10, 1024  ;;  %s895_s22 = scalar_lea.hbm %s1316_s4, 2048 }
 0x195   : > { %p892_p13 = scmp.ne.s32.totalorder %s1263_s10, %s891_s6  ;;  %p896_p2 = scmp.lt.u32.totalorder %s1263_s10, %s1316_s4 }
 0x196   : > { %p897_p11 = scmp.lt.u32.totalorder %s895_s22, %s891_s6  ;;  %p899_p1 = scmp.lt.u32.totalorder %s891_s6, %s1263_s10 }
 0x197   : > { %p893_p8 = pnand %p892_p13, %p1342_p6 }
 0x198   : > { %p898_p0 = por %p897_p11, %p896_p2 }
 0x199   : > { %p894_p12 = pneg %p893_p8 }
 0x19a   : > { %p900_p10 = por %p899_p1, %p898_p0 }
 0x19c   : > { %p901_p3 = pnand %p900_p10, %p894_p12 }
 0x19e   : > { %904 = shalt.err (!%p901_p3)
}
 0x19f   : > { %s983_s25 = smov 256   ;;  %s984_s27 = smov 16  }
 0x1a0   : > { %678 = dma.vmem_to_hbm [thread:$0]  (%p1342_p6), %s1258_s14, 1024, %s1263_s10, %s463_s11, %s983_s25, %s983_s25, %s984_s27  }
 0x1a1 PF: > { %s494_s21 = sand.u32 1, %s951_s15   ;;  %p1343_p4 = scmp.ne.s32.totalorder %s1326_s24, 0 }
 0x1a2   : > { %p1344_p9 = scmp.ge.s32.totalorder %s971_s20, 2  ;;  %s495_s23 = scalar_lea.sflag [#allocation4], %s494_s21 }
 0x1a4   : > { %p695_p5 = pnand %p1344_p9, %p1343_p4 }
 0x1a6   : > { %946 = dma.done.wait (!%p695_p5), %s495_s23, 1024  }
 0x1a7   : > { %948 = vsyncadd (!%p695_p5), %s495_s23, 4294966272  ;;  %s24_s20 = sadd.s32 1, %s971_s20   ;;  %s1345_s28 = sld [smem:[#allocation16_spill]] }
 0x1a8   : > { %p21_p7 = scmp.ge.s32.totalorder %s24_s20, 4   ;;  %s1346_s15 = smov %s955_s16 }
 0x1a9   : > { %s1347_s16 = smov %s959_s17  ;;  %s1348_s17 = smov %s1151_s5 }
 0x1aa   : > { %s1349_s18 = smov %s967_s19  ;;  %23 = sbr.rel (!%p21_p7) target bundleno = 13 (0xd), region = 102 }
 0x1ad   : > { %s1350_s19 = smov %s1345_s28 }
 0x1b1   :  { %500 = vsyncpa [#allocation3], 1 }
 0x1b2   :  { %502 = vsyncpa [#allocation3 + $0x1], 1 }
 0x1b3   :  { %503 = vsyncpa [#allocation6], 1 }
 0x1b4   :  { %505 = vsyncpa [#allocation6 + $0x1], 1 }
 0x1b5   :  { %506 = vsyncpa [#allocation9], 1 }
 0x1b6   :  { %507 = vsyncpa [#allocation4], 1 }
 0x1b7   :  { %509 = vsyncpa [#allocation4 + $0x1], 1 }

</bundles_post_ra>
